<compile_context>
chip_gen: v6e
topology: v6e:2x2x1
jax: 0.10.0
libtpu: 0.0.40
codegen_flags: <defaults>
</compile_context>

<pallas_src>
import jax
import jax.numpy as jnp
from jax.experimental import pallas as pl
from jax.experimental.pallas import tpu as pltpu

_LANES = 128


def _elementwise_kernel(x_ref,
                        add_ref, sub_ref, mul_ref, div_ref, pow_ref,
                        gt_ref, lt_ref, eq_ref):
    x = x_ref[...]
    add_ref[...] = x + 5.0
    sub_ref[...] = x - 2.0
    mul_ref[...] = x * 3.0
    div_ref[...] = x * 0.25                      # x / 4 (bit-exact for f32)
    pow_ref[...] = x * x                         # x ** 2
    # Comparison masks stored in the output ref's dtype (bool preferred;
    # astype is a no-op for bool, a cheap extend for the int8 fallback).
    gt_ref[...] = (x > 10.0).astype(gt_ref.dtype)
    lt_ref[...] = (x < 5.0).astype(lt_ref.dtype)
    eq_ref[...] = (x == 3.0).astype(eq_ref.dtype)


def _pick_tile_rows():
    """Generation-aware row-tile size (biggest tile that is comfortably safe)."""
    try:
        kind = jax.devices()[0].device_kind.lower()
    except Exception:
        return 1024
    # v6e (128 MiB VMEM) and v7x (64 MiB/TC) afford 2048-row tiles
    # (~13.5 MiB double-buffered); v5e's 16 MiB scoped default keeps 1024.
    if "v6" in kind or "v7" in kind:
        return 2048
    return 1024


def _build_call(rows, tile_rows, out_dtype, cmp_dtype, n_elems):
    grid = (pl.cdiv(rows, tile_rows),)
    f32_out = jax.ShapeDtypeStruct((rows, _LANES), out_dtype)
    cmp_out = jax.ShapeDtypeStruct((rows, _LANES), cmp_dtype)
    spec = pl.BlockSpec((tile_rows, _LANES), lambda i: (i, 0))

    # Explicit VMEM budget: 9 arrays/step (1 f32 in + 5 f32 out + 3 one-byte
    # masks), double-buffered by the pipeline, plus headroom.
    per_step_bytes = tile_rows * _LANES * (4 + 5 * 4 + 3 * 1)
    vmem_limit = int(2 * per_step_bytes + (8 << 20))

    return pl.pallas_call(
        _elementwise_kernel,
        out_shape=(f32_out, f32_out, f32_out, f32_out, f32_out,
                   cmp_out, cmp_out, cmp_out),
        grid_spec=pltpu.PrefetchScalarGridSpec(
            num_scalar_prefetch=0,
            grid=grid,
            in_specs=[spec],
            out_specs=[spec] * 8,
        ),
        compiler_params=pltpu.CompilerParams(
            dimension_semantics=("parallel",),   # shard row tiles across TCs
            vmem_limit_bytes=vmem_limit,
        ),
        cost_estimate=pl.CostEstimate(
            flops=8 * n_elems,
            transcendentals=0,
            bytes_accessed=27 * n_elems,         # pure bandwidth op
        ),
    )


_BOOL_OUT_SUPPORTED = None


def _bool_outputs_supported():
    """One-time probe: can this Mosaic lowering emit bool VMEM outputs?"""
    global _BOOL_OUT_SUPPORTED
    if _BOOL_OUT_SUPPORTED is None:
        try:
            probe = jnp.zeros((8, _LANES), jnp.float32)
            out = _build_call(8, 8, jnp.float32, jnp.bool_, probe.size)(probe)
            jax.block_until_ready(out)
            _BOOL_OUT_SUPPORTED = True
        except Exception:
            _BOOL_OUT_SUPPORTED = False
    return _BOOL_OUT_SUPPORTED


def pt_module_forward(x, *, tile_rows=None):
    """x: float32 NCHW array [B, C, H, W]. Returns dict matching PtModule."""
    orig_shape = x.shape
    n_elems = x.size
    if tile_rows is None:
        tile_rows = _pick_tile_rows()

    x_flat = x.reshape(-1)
    padded_elems = n_elems
    if n_elems % _LANES != 0:
        # Minimal pad for ragged element counts: up to a multiple of 8 rows.
        padded_elems = -(-n_elems // (8 * _LANES)) * (8 * _LANES)
        x_flat = jnp.pad(x_flat, (0, padded_elems - n_elems))
    rows = padded_elems // _LANES
    x2d = x_flat.reshape(rows, _LANES)

    # Whole array as a single block if it fits one tile (always legal),
    # otherwise a fixed tile_rows block (multiple of 8 and 32).
    tr = rows if rows <= tile_rows else tile_rows

    cmp_dtype = jnp.bool_ if _bool_outputs_supported() else jnp.int8
    outs = _build_call(rows, tr, x.dtype, cmp_dtype, n_elems)(x2d)

    def unflatten(a, want_bool=False):
        if padded_elems != n_elems:
            a = a.reshape(-1)[:n_elems]
        a = a.reshape(orig_shape)
        if want_bool and a.dtype != jnp.bool_:
            a = a.astype(jnp.bool_)      # only on the int8 fallback path
        return a

    add, sub, mul, div, pw, gt, lt, eq = outs
    return {
        'addition': unflatten(add),
        'subtraction': unflatten(sub),
        'multiplication': unflatten(mul),
        'division': unflatten(div),
        'power': unflatten(pw),
        'greater_than': unflatten(gt, want_bool=True),
        'less_than': unflatten(lt, want_bool=True),
        'equal_to': unflatten(eq, want_bool=True),
    }


def _check(x):
    out = pt_module_forward(x)
    jax.block_until_ready(out)
    ref = {
        'addition': x + 5,
        'subtraction': x - 2,
        'multiplication': x * 3,
        'division': x / 4,
        'power': x ** 2,
        'greater_than': x > 10,
        'less_than': x < 5,
        'equal_to': x == 3,
    }
    for k in ref:
        assert out[k].shape == ref[k].shape, k
        assert out[k].dtype == ref[k].dtype, k
        assert bool(jnp.all(out[k] == ref[k])), k


if __name__ == "__main__":
    key = jax.random.PRNGKey(0)
    k0, k1, k2 = jax.random.split(key, 3)

    # Small NCHW input with values near the comparison thresholds.
    x_small = jax.random.randint(
        k0, (2, 4, 16, 16), minval=-2, maxval=15).astype(jnp.float32)
    _check(x_small)

    # Ragged element count (exercises the minimal-pad path).
    x_ragged = jax.random.randint(
        k1, (3, 5, 7, 11), minval=-2, maxval=15).astype(jnp.float32)
    _check(x_ragged)

    # Larger input (exercises the multi-tile pipelined grid path).
    x_big = jax.random.randint(
        k2, (4, 8, 128, 128), minval=-2, maxval=15).astype(jnp.float32)
    _check(x_big)

    print("KERNEL_OK")
</pallas_src>

<mosaic_0001>
module attributes {stable_mosaic.version = 11 : i64} {
  func.func @_elementwise_kernel(%arg0: i32, %arg1: memref<8x128xf32, #tpu.memory_space<vmem>>, %arg2: memref<8x128xf32, #tpu.memory_space<vmem>>, %arg3: memref<8x128xf32, #tpu.memory_space<vmem>>, %arg4: memref<8x128xf32, #tpu.memory_space<vmem>>, %arg5: memref<8x128xf32, #tpu.memory_space<vmem>>, %arg6: memref<8x128xf32, #tpu.memory_space<vmem>>, %arg7: memref<8x128xi32, #tpu.memory_space<vmem>>, %arg8: memref<8x128xi32, #tpu.memory_space<vmem>>, %arg9: memref<8x128xi32, #tpu.memory_space<vmem>>) attributes {dimension_semantics = [#tpu.dimension_semantics<parallel>], iteration_bounds = array<i64: 1>, scalar_prefetch = 0 : i64, scratch_operands = 0 : i64, tpu.core_type = #tpu.core_type<tc>, window_params = [{transform_indices = @transform_0, window_bounds = array<i64: 8, 128>}, {transform_indices = @transform_1, window_bounds = array<i64: 8, 128>}, {transform_indices = @transform_2, window_bounds = array<i64: 8, 128>}, {transform_indices = @transform_3, window_bounds = array<i64: 8, 128>}, {transform_indices = @transform_4, window_bounds = array<i64: 8, 128>}, {transform_indices = @transform_5, window_bounds = array<i64: 8, 128>}, {transform_indices = @transform_6, window_bounds = array<i64: 8, 128>}, {transform_indices = @transform_7, window_bounds = array<i64: 8, 128>}, {transform_indices = @transform_8, window_bounds = array<i64: 8, 128>}]} {
    %c0 = arith.constant 0 : index
    %c0_0 = arith.constant 0 : index
    %0 = vector.load %arg1[%c0, %c0_0] : memref<8x128xf32, #tpu.memory_space<vmem>>, vector<8x128xf32>
    %cst = arith.constant 5.000000e+00 : f32
    %1 = vector.broadcast %cst : f32 to vector<8x128xf32>
    %2 = arith.addf %0, %1 : vector<8x128xf32>
    %c0_1 = arith.constant 0 : index
    %c0_2 = arith.constant 0 : index
    %3 = vector.load %arg2[%c0_1, %c0_2] : memref<8x128xf32, #tpu.memory_space<vmem>>, vector<8x128xf32>
    tpu.vector_store %arg2[%c0_1, %c0_2], %2 {strides = array<i32>} : memref<8x128xf32, #tpu.memory_space<vmem>>, vector<8x128xf32>,
    %cst_3 = arith.constant 2.000000e+00 : f32
    %4 = vector.broadcast %cst_3 : f32 to vector<8x128xf32>
    %5 = arith.subf %0, %4 : vector<8x128xf32>
    %c0_4 = arith.constant 0 : index
    %c0_5 = arith.constant 0 : index
    %6 = vector.load %arg3[%c0_4, %c0_5] : memref<8x128xf32, #tpu.memory_space<vmem>>, vector<8x128xf32>
    tpu.vector_store %arg3[%c0_4, %c0_5], %5 {strides = array<i32>} : memref<8x128xf32, #tpu.memory_space<vmem>>, vector<8x128xf32>,
    %cst_6 = arith.constant 3.000000e+00 : f32
    %7 = vector.broadcast %cst_6 : f32 to vector<8x128xf32>
    %8 = arith.mulf %0, %7 : vector<8x128xf32>
    %c0_7 = arith.constant 0 : index
    %c0_8 = arith.constant 0 : index
    %9 = vector.load %arg4[%c0_7, %c0_8] : memref<8x128xf32, #tpu.memory_space<vmem>>, vector<8x128xf32>
    tpu.vector_store %arg4[%c0_7, %c0_8], %8 {strides = array<i32>} : memref<8x128xf32, #tpu.memory_space<vmem>>, vector<8x128xf32>,
    %cst_9 = arith.constant 2.500000e-01 : f32
    %10 = vector.broadcast %cst_9 : f32 to vector<8x128xf32>
    %11 = arith.mulf %0, %10 : vector<8x128xf32>
    %c0_10 = arith.constant 0 : index
    %c0_11 = arith.constant 0 : index
    %12 = vector.load %arg5[%c0_10, %c0_11] : memref<8x128xf32, #tpu.memory_space<vmem>>, vector<8x128xf32>
    tpu.vector_store %arg5[%c0_10, %c0_11], %11 {strides = array<i32>} : memref<8x128xf32, #tpu.memory_space<vmem>>, vector<8x128xf32>,
    %13 = arith.mulf %0, %0 : vector<8x128xf32>
    %c0_12 = arith.constant 0 : index
    %c0_13 = arith.constant 0 : index
    %14 = vector.load %arg6[%c0_12, %c0_13] : memref<8x128xf32, #tpu.memory_space<vmem>>, vector<8x128xf32>
    tpu.vector_store %arg6[%c0_12, %c0_13], %13 {strides = array<i32>} : memref<8x128xf32, #tpu.memory_space<vmem>>, vector<8x128xf32>,
    %cst_14 = arith.constant 1.000000e+01 : f32
    %15 = vector.broadcast %cst_14 : f32 to vector<8x128xf32>
    %16 = arith.cmpf ogt, %0, %15 : vector<8x128xf32>
    %c0_15 = arith.constant 0 : index
    %c0_16 = arith.constant 0 : index
    %17 = vector.load %arg7[%c0_15, %c0_16] : memref<8x128xi32, #tpu.memory_space<vmem>>, vector<8x128xi32>
    %18 = arith.extui %16 : vector<8x128xi1> to vector<8x128xi32>
    %cst_17 = arith.constant dense<0> : vector<8x128xi32>
    %19 = arith.cmpi ne, %17, %cst_17 : vector<8x128xi32>
    tpu.vector_store %arg7[%c0_15, %c0_16], %18 {strides = array<i32>} : memref<8x128xi32, #tpu.memory_space<vmem>>, vector<8x128xi32>,
    %cst_18 = arith.constant 5.000000e+00 : f32
    %20 = vector.broadcast %cst_18 : f32 to vector<8x128xf32>
    %21 = arith.cmpf olt, %0, %20 : vector<8x128xf32>
    %c0_19 = arith.constant 0 : index
    %c0_20 = arith.constant 0 : index
    %22 = vector.load %arg8[%c0_19, %c0_20] : memref<8x128xi32, #tpu.memory_space<vmem>>, vector<8x128xi32>
    %23 = arith.extui %21 : vector<8x128xi1> to vector<8x128xi32>
    %cst_21 = arith.constant dense<0> : vector<8x128xi32>
    %24 = arith.cmpi ne, %22, %cst_21 : vector<8x128xi32>
    tpu.vector_store %arg8[%c0_19, %c0_20], %23 {strides = array<i32>} : memref<8x128xi32, #tpu.memory_space<vmem>>, vector<8x128xi32>,
    %cst_22 = arith.constant 3.000000e+00 : f32
    %25 = vector.broadcast %cst_22 : f32 to vector<8x128xf32>
    %26 = arith.cmpf oeq, %0, %25 : vector<8x128xf32>
    %c0_23 = arith.constant 0 : index
    %c0_24 = arith.constant 0 : index
    %27 = vector.load %arg9[%c0_23, %c0_24] : memref<8x128xi32, #tpu.memory_space<vmem>>, vector<8x128xi32>
    %28 = arith.extui %26 : vector<8x128xi1> to vector<8x128xi32>
    %cst_25 = arith.constant dense<0> : vector<8x128xi32>
    %29 = arith.cmpi ne, %27, %cst_25 : vector<8x128xi32>
    tpu.vector_store %arg9[%c0_23, %c0_24], %28 {strides = array<i32>} : memref<8x128xi32, #tpu.memory_space<vmem>>, vector<8x128xi32>,
    return
  }
  func.func @transform_0(%arg0: i32) -> (i32, i32) {
    %c0_i32 = arith.constant 0 : i32
    %c0_i32_0 = arith.constant 0 : i32
    return %arg0, %c0_i32 : i32, i32
  }
  func.func @transform_1(%arg0: i32) -> (i32, i32) {
    %c0_i32 = arith.constant 0 : i32
    %c0_i32_0 = arith.constant 0 : i32
    return %arg0, %c0_i32 : i32, i32
  }
  func.func @transform_2(%arg0: i32) -> (i32, i32) {
    %c0_i32 = arith.constant 0 : i32
    %c0_i32_0 = arith.constant 0 : i32
    return %arg0, %c0_i32 : i32, i32
  }
  func.func @transform_3(%arg0: i32) -> (i32, i32) {
    %c0_i32 = arith.constant 0 : i32
    %c0_i32_0 = arith.constant 0 : i32
    return %arg0, %c0_i32 : i32, i32
  }
  func.func @transform_4(%arg0: i32) -> (i32, i32) {
    %c0_i32 = arith.constant 0 : i32
    %c0_i32_0 = arith.constant 0 : i32
    return %arg0, %c0_i32 : i32, i32
  }
  func.func @transform_5(%arg0: i32) -> (i32, i32) {
    %c0_i32 = arith.constant 0 : i32
    %c0_i32_0 = arith.constant 0 : i32
    return %arg0, %c0_i32 : i32, i32
  }
  func.func @transform_6(%arg0: i32) -> (i32, i32) {
    %c0_i32 = arith.constant 0 : i32
    %c0_i32_0 = arith.constant 0 : i32
    return %arg0, %c0_i32 : i32, i32
  }
  func.func @transform_7(%arg0: i32) -> (i32, i32) {
    %c0_i32 = arith.constant 0 : i32
    %c0_i32_0 = arith.constant 0 : i32
    return %arg0, %c0_i32 : i32, i32
  }
  func.func @transform_8(%arg0: i32) -> (i32, i32) {
    %c0_i32 = arith.constant 0 : i32
    %c0_i32_0 = arith.constant 0 : i32
    return %arg0, %c0_i32 : i32, i32
  }
}

module attributes {stable_mosaic.version = 11 : i64} {
  func.func @_elementwise_kernel(%arg0: i32, %arg1: memref<16x128xf32, #tpu.memory_space<vmem>>, %arg2: memref<16x128xf32, #tpu.memory_space<vmem>>, %arg3: memref<16x128xf32, #tpu.memory_space<vmem>>, %arg4: memref<16x128xf32, #tpu.memory_space<vmem>>, %arg5: memref<16x128xf32, #tpu.memory_space<vmem>>, %arg6: memref<16x128xf32, #tpu.memory_space<vmem>>, %arg7: memref<16x128xi8, #tpu.memory_space<vmem>>, %arg8: memref<16x128xi8, #tpu.memory_space<vmem>>, %arg9: memref<16x128xi8, #tpu.memory_space<vmem>>) attributes {dimension_semantics = [#tpu.dimension_semantics<parallel>], iteration_bounds = array<i64: 1>, scalar_prefetch = 0 : i64, scratch_operands = 0 : i64, tpu.core_type = #tpu.core_type<tc>, window_params = [{transform_indices = @transform_0, window_bounds = array<i64: 16, 128>}, {transform_indices = @transform_1, window_bounds = array<i64: 16, 128>}, {transform_indices = @transform_2, window_bounds = array<i64: 16, 128>}, {transform_indices = @transform_3, window_bounds = array<i64: 16, 128>}, {transform_indices = @transform_4, window_bounds = array<i64: 16, 128>}, {transform_indices = @transform_5, window_bounds = array<i64: 16, 128>}, {transform_indices = @transform_6, window_bounds = array<i64: 16, 128>}, {transform_indices = @transform_7, window_bounds = array<i64: 16, 128>}, {transform_indices = @transform_8, window_bounds = array<i64: 16, 128>}]} {
    %c0 = arith.constant 0 : index
    %c0_0 = arith.constant 0 : index
    %0 = vector.load %arg1[%c0, %c0_0] : memref<16x128xf32, #tpu.memory_space<vmem>>, vector<16x128xf32>
    %cst = arith.constant 5.000000e+00 : f32
    %1 = vector.broadcast %cst : f32 to vector<16x128xf32>
    %2 = arith.addf %0, %1 : vector<16x128xf32>
    %c0_1 = arith.constant 0 : index
    %c0_2 = arith.constant 0 : index
    %3 = vector.load %arg2[%c0_1, %c0_2] : memref<16x128xf32, #tpu.memory_space<vmem>>, vector<16x128xf32>
    tpu.vector_store %arg2[%c0_1, %c0_2], %2 {strides = array<i32>} : memref<16x128xf32, #tpu.memory_space<vmem>>, vector<16x128xf32>,
    %cst_3 = arith.constant 2.000000e+00 : f32
    %4 = vector.broadcast %cst_3 : f32 to vector<16x128xf32>
    %5 = arith.subf %0, %4 : vector<16x128xf32>
    %c0_4 = arith.constant 0 : index
    %c0_5 = arith.constant 0 : index
    %6 = vector.load %arg3[%c0_4, %c0_5] : memref<16x128xf32, #tpu.memory_space<vmem>>, vector<16x128xf32>
    tpu.vector_store %arg3[%c0_4, %c0_5], %5 {strides = array<i32>} : memref<16x128xf32, #tpu.memory_space<vmem>>, vector<16x128xf32>,
    %cst_6 = arith.constant 3.000000e+00 : f32
    %7 = vector.broadcast %cst_6 : f32 to vector<16x128xf32>
    %8 = arith.mulf %0, %7 : vector<16x128xf32>
    %c0_7 = arith.constant 0 : index
    %c0_8 = arith.constant 0 : index
    %9 = vector.load %arg4[%c0_7, %c0_8] : memref<16x128xf32, #tpu.memory_space<vmem>>, vector<16x128xf32>
    tpu.vector_store %arg4[%c0_7, %c0_8], %8 {strides = array<i32>} : memref<16x128xf32, #tpu.memory_space<vmem>>, vector<16x128xf32>,
    %cst_9 = arith.constant 2.500000e-01 : f32
    %10 = vector.broadcast %cst_9 : f32 to vector<16x128xf32>
    %11 = arith.mulf %0, %10 : vector<16x128xf32>
    %c0_10 = arith.constant 0 : index
    %c0_11 = arith.constant 0 : index
    %12 = vector.load %arg5[%c0_10, %c0_11] : memref<16x128xf32, #tpu.memory_space<vmem>>, vector<16x128xf32>
    tpu.vector_store %arg5[%c0_10, %c0_11], %11 {strides = array<i32>} : memref<16x128xf32, #tpu.memory_space<vmem>>, vector<16x128xf32>,
    %13 = arith.mulf %0, %0 : vector<16x128xf32>
    %c0_12 = arith.constant 0 : index
    %c0_13 = arith.constant 0 : index
    %14 = vector.load %arg6[%c0_12, %c0_13] : memref<16x128xf32, #tpu.memory_space<vmem>>, vector<16x128xf32>
    tpu.vector_store %arg6[%c0_12, %c0_13], %13 {strides = array<i32>} : memref<16x128xf32, #tpu.memory_space<vmem>>, vector<16x128xf32>,
    %cst_14 = arith.constant 1.000000e+01 : f32
    %15 = vector.broadcast %cst_14 : f32 to vector<16x128xf32>
    %16 = arith.cmpf ogt, %0, %15 : vector<16x128xf32>
    %17 = arith.extui %16 : vector<16x128xi1> to vector<16x128xi8>
    %c0_15 = arith.constant 0 : index
    %c0_16 = arith.constant 0 : index
    %18 = vector.load %arg7[%c0_15, %c0_16] : memref<16x128xi8, #tpu.memory_space<vmem>>, vector<16x128xi8>
    tpu.vector_store %arg7[%c0_15, %c0_16], %17 {strides = array<i32>} : memref<16x128xi8, #tpu.memory_space<vmem>>, vector<16x128xi8>,
    %cst_17 = arith.constant 5.000000e+00 : f32
    %19 = vector.broadcast %cst_17 : f32 to vector<16x128xf32>
    %20 = arith.cmpf olt, %0, %19 : vector<16x128xf32>
    %21 = arith.extui %20 : vector<16x128xi1> to vector<16x128xi8>
    %c0_18 = arith.constant 0 : index
    %c0_19 = arith.constant 0 : index
    %22 = vector.load %arg8[%c0_18, %c0_19] : memref<16x128xi8, #tpu.memory_space<vmem>>, vector<16x128xi8>
    tpu.vector_store %arg8[%c0_18, %c0_19], %21 {strides = array<i32>} : memref<16x128xi8, #tpu.memory_space<vmem>>, vector<16x128xi8>,
    %cst_20 = arith.constant 3.000000e+00 : f32
    %23 = vector.broadcast %cst_20 : f32 to vector<16x128xf32>
    %24 = arith.cmpf oeq, %0, %23 : vector<16x128xf32>
    %25 = arith.extui %24 : vector<16x128xi1> to vector<16x128xi8>
    %c0_21 = arith.constant 0 : index
    %c0_22 = arith.constant 0 : index
    %26 = vector.load %arg9[%c0_21, %c0_22] : memref<16x128xi8, #tpu.memory_space<vmem>>, vector<16x128xi8>
    tpu.vector_store %arg9[%c0_21, %c0_22], %25 {strides = array<i32>} : memref<16x128xi8, #tpu.memory_space<vmem>>, vector<16x128xi8>,
    return
  }
  func.func @transform_0(%arg0: i32) -> (i32, i32) {
    %c0_i32 = arith.constant 0 : i32
    %c0_i32_0 = arith.constant 0 : i32
    return %arg0, %c0_i32 : i32, i32
  }
  func.func @transform_1(%arg0: i32) -> (i32, i32) {
    %c0_i32 = arith.constant 0 : i32
    %c0_i32_0 = arith.constant 0 : i32
    return %arg0, %c0_i32 : i32, i32
  }
  func.func @transform_2(%arg0: i32) -> (i32, i32) {
    %c0_i32 = arith.constant 0 : i32
    %c0_i32_0 = arith.constant 0 : i32
    return %arg0, %c0_i32 : i32, i32
  }
  func.func @transform_3(%arg0: i32) -> (i32, i32) {
    %c0_i32 = arith.constant 0 : i32
    %c0_i32_0 = arith.constant 0 : i32
    return %arg0, %c0_i32 : i32, i32
  }
  func.func @transform_4(%arg0: i32) -> (i32, i32) {
    %c0_i32 = arith.constant 0 : i32
    %c0_i32_0 = arith.constant 0 : i32
    return %arg0, %c0_i32 : i32, i32
  }
  func.func @transform_5(%arg0: i32) -> (i32, i32) {
    %c0_i32 = arith.constant 0 : i32
    %c0_i32_0 = arith.constant 0 : i32
    return %arg0, %c0_i32 : i32, i32
  }
  func.func @transform_6(%arg0: i32) -> (i32, i32) {
    %c0_i32 = arith.constant 0 : i32
    %c0_i32_0 = arith.constant 0 : i32
    return %arg0, %c0_i32 : i32, i32
  }
  func.func @transform_7(%arg0: i32) -> (i32, i32) {
    %c0_i32 = arith.constant 0 : i32
    %c0_i32_0 = arith.constant 0 : i32
    return %arg0, %c0_i32 : i32, i32
  }
  func.func @transform_8(%arg0: i32) -> (i32, i32) {
    %c0_i32 = arith.constant 0 : i32
    %c0_i32_0 = arith.constant 0 : i32
    return %arg0, %c0_i32 : i32, i32
  }
}

</mosaic_0001>

<bundles_post_ra>
// kernel: tpu_custom_call.1
= control target key start
LH: loop header
LB: loop body
LE: loop exit
PB: predicated region body
PF: predicated region fallthrough
CT: control target
= control target key end

     0   :  { %14 = vsyncpa [#allocation3], 0  ;;  %s375_s0 = inlined_call_operand.hbm [shape: f32[8,128], index: 0, kind: input, shape index: {}]   ;;  %s376_s1 = inlined_call_operand.hbm [shape: f32[8,128], index: 1, kind: output, shape index: {0}]   ;;  %s377_s2 = inlined_call_operand.hbm [shape: f32[8,128], index: 2, kind: output, shape index: {1}]   ;;  %s378_s3 = inlined_call_operand.hbm [shape: f32[8,128], index: 3, kind: output, shape index: {2}]   ;;  %s379_s4 = inlined_call_operand.hbm [shape: f32[8,128], index: 4, kind: output, shape index: {3}]   ;;  %s380_s5 = inlined_call_operand.hbm [shape: f32[8,128], index: 5, kind: output, shape index: {4}]   ;;  %s381_s6 = inlined_call_operand.vmem [shape: s32[8,128], index: 6, kind: output, shape index: {5}]   ;;  %s382_s7 = inlined_call_operand.vmem [shape: s32[8,128], index: 7, kind: output, shape index: {6}]   ;;  %s383_s8 = inlined_call_operand.vmem [shape: s32[8,128], index: 8, kind: output, shape index: {7}]  }
   0x1   :  { %15 = vsyncpa [#allocation4], 0 }
   0x2   :  { %16 = vsyncpa [#allocation7], 0 }
   0x3   :  { %17 = vsyncpa [#allocation10], 0  ;;  %s268_s27 = smov [#allocation2]  }
   0x4   :  { %s24_s28 = sshll.u32 %s268_s27, 4  ;;  %s25_s28 = int_to_ptr.vmem [resolvable:$true] %s24_s28 }
   0x5   :  { %s148_s29 = scalar_lea.vmem %s25_s28, 128  ;;  %p153_p1 = scmp.lt.s32.totalorder %s25_s28, %s25_s28 }
   0x6   :  { %p149_p0 = scmp.ne.s32.totalorder %s25_s28, %s148_s29  ;;  %p154_p2 = scmp.lt.s32.totalorder %s148_s29, %s148_s29 }
   0x8   :  { %p155_p3 = por %p154_p2, %p153_p1 }
   0xa   :  { %p156_p4 = pnand %p155_p3, %p149_p0 }
   0xc   :  { %159 = shalt.err (!%p156_p4)
}
   0xd   :  { %27 = dma.hbm_to_vmem [thread:$0]  %s375_s0, 128, %s25_s28, [#allocation3]  }
   0xe   :  { %260 = dma.done.wait [#allocation3], 128  }
   0xf   :  { %261 = vsyncadd [#allocation3], 4294967168  ;;  %s269_s10 = smov [#allocation6]   ;;  %s270_s12 = smov [#allocation9]   ;;  %v31_v0 = vld [vmem:[#allocation2] sm:$0xff]  ;;  %v274_v6 = vmov 0  }
  0x10   :  { %s67_s11 = sshll.u32 %s269_s10, 4  ;;  %s87_s13 = sshll.u32 %s270_s12, 4  ;;  %v132_v1 = vadd.f32 -2.0, %v31_v0  ;;  %v38_v2 = vmul.f32 0.25, %v31_v0  ;;  %v32_v3 = vadd.f32 5.0, %v31_v0  ;;  %v36_v4 = vmul.f32 3.0, %v31_v0  ;;  %s68_s11 = int_to_ptr.vmem [resolvable:$true] %s67_s11  ;;  %s323_s13 = int_to_ptr.vmem [resolvable:$true] %s87_s13 }
  0x11   :  { %s271_s14 = smov [#allocation5]   ;;  %s272_s16 = smov [#allocation8]   ;;  %v40_v5 = vmul.f32 %v31_v0, %v31_v0  ;;  %vm42_vm0 = vcmp.gt.f32.partialorder %v31_v0, 10.0  ;;  %vm45_vm1 = vcmp.lt.f32.partialorder %v31_v0, 5.0  ;;  %vm48_vm2 = vcmp.eq.f32.partialorder %v31_v0, 3.0 }
  0x12   :  { %s57_s15 = sshll.u32 %s271_s14, 4  ;;  %s77_s17 = sshll.u32 %s272_s16, 4  ;;  %35 = vst [vmem:[#allocation6] sm:$0xff] %v132_v1  ;;  %39 = vst [vmem:[#allocation9] sm:$0xff] %v38_v2  ;;  %v43_v7 = vsel %vm42_vm0, 1, %v274_v6  ;;  %v46_v8 = vsel %vm45_vm1, 1, %v274_v6  ;;  %s325_s15 = int_to_ptr.vmem [resolvable:$true] %s57_s15  ;;  %s327_s17 = int_to_ptr.vmem [resolvable:$true] %s77_s17 }
  0x13   :  { %s273_s18 = smov [#allocation11]   ;;  %33 = vst [vmem:[#allocation5] sm:$0xff] %v32_v3  ;;  %37 = vst [vmem:[#allocation8] sm:$0xff] %v36_v4  ;;  %v49_v9 = vsel %vm48_vm2, 1, %v274_v6  ;;  %s160_s0 = scalar_lea.vmem %s68_s11, 128 }
  0x14   :  { %s97_s19 = sshll.u32 %s273_s18, 4  ;;  %41 = vst [vmem:[#allocation11] sm:$0xff] %v40_v5  ;;  %p161_p5 = scmp.ne.s32.totalorder %s68_s11, %s160_s0  ;;  %s329_s19 = int_to_ptr.vmem [resolvable:$true] %s97_s19 }
  0x15   :  { %p165_p6 = scmp.lt.s32.totalorder %s68_s11, %s68_s11  ;;  %p166_p7 = scmp.lt.s32.totalorder %s160_s0, %s160_s0 }
  0x17   :  { %p167_p8 = por %p166_p7, %p165_p6 }
  0x19   :  { %p168_p9 = pnand %p167_p8, %p161_p5 }
  0x1b   :  { %171 = shalt.err (!%p168_p9)
}
  0x1c   :  { %70 = dma.vmem_to_hbm [thread:$0]  %s68_s11, 128, %s377_s2, [#allocation7]   ;;  %44 = vst [vmem:[%s381_s6] sm:$0xff] %v43_v7  ;;  %47 = vst [vmem:[%s382_s7] sm:$0xff] %v46_v8 }
  0x1d   :  { %50 = vst [vmem:[%s383_s8] sm:$0xff] %v49_v9  ;;  %s180_s28 = scalar_lea.vmem %s323_s13, 128  ;;  %p185_p11 = scmp.lt.s32.totalorder %s323_s13, %s323_s13 }
  0x1e   :  { %p181_p10 = scmp.ne.s32.totalorder %s323_s13, %s180_s28  ;;  %p186_p12 = scmp.lt.s32.totalorder %s180_s28, %s180_s28 }
  0x20   :  { %p187_p13 = por %p186_p12, %p185_p11 }
  0x22   :  { %p188_p0 = pnand %p187_p13, %p181_p10 }
  0x24   :  { %191 = shalt.err (!%p188_p0)
}
  0x25   :  { %90 = dma.vmem_to_hbm [thread:$0]  %s323_s13, 128, %s379_s4, [#allocation10]  }
  0x26   :  { %s200_s6 = scalar_lea.vmem %s325_s15, 128  ;;  %p205_p2 = scmp.lt.s32.totalorder %s325_s15, %s325_s15 }
  0x27   :  { %p201_p1 = scmp.ne.s32.totalorder %s325_s15, %s200_s6  ;;  %p206_p3 = scmp.lt.s32.totalorder %s200_s6, %s200_s6 }
  0x29   :  { %p207_p4 = por %p206_p3, %p205_p2 }
  0x2b   :  { %p208_p5 = pnand %p207_p4, %p201_p1 }
  0x2d   :  { %211 = shalt.err (!%p208_p5)
}
  0x2e   :  { %60 = dma.vmem_to_hbm [thread:$0]  %s325_s15, 128, %s376_s1, [#allocation4]  }
  0x2f   :  { %s220_s30 = scalar_lea.vmem %s327_s17, 128  ;;  %p225_p7 = scmp.lt.s32.totalorder %s327_s17, %s327_s17 }
  0x30   :  { %p221_p6 = scmp.ne.s32.totalorder %s327_s17, %s220_s30  ;;  %p226_p8 = scmp.lt.s32.totalorder %s220_s30, %s220_s30 }
  0x32   :  { %p227_p9 = por %p226_p8, %p225_p7 }
  0x34   :  { %p228_p10 = pnand %p227_p9, %p221_p6 }
  0x36   :  { %231 = shalt.err (!%p228_p10)
}
  0x37   :  { %80 = dma.vmem_to_hbm [thread:$0]  %s327_s17, 128, %s378_s3, [#allocation7]  }
  0x38   :  { %s240_s10 = scalar_lea.vmem %s329_s19, 128  ;;  %p245_p12 = scmp.lt.s32.totalorder %s329_s19, %s329_s19 }
  0x39   :  { %p241_p11 = scmp.ne.s32.totalorder %s329_s19, %s240_s10  ;;  %p246_p13 = scmp.lt.s32.totalorder %s240_s10, %s240_s10 }
  0x3b   :  { %p247_p0 = por %p246_p13, %p245_p12 }
  0x3d   :  { %p248_p1 = pnand %p247_p0, %p241_p11 }
  0x3f   :  { %251 = shalt.err (!%p248_p1)
}
  0x40   :  { %100 = dma.vmem_to_hbm [thread:$0]  %s329_s19, 128, %s380_s5, [#allocation10]  }
  0x41   :  { %262 = dma.done.wait [#allocation4], 128  }
  0x42   :  { %263 = vsyncadd [#allocation4], 4294967168 }
  0x43   :  { %264 = dma.done.wait [#allocation7], 256  }
  0x44   :  { %265 = vsyncadd [#allocation7], 4294967040 }
  0x45   :  { %266 = dma.done.wait [#allocation10], 256  }
  0x46   :  { %267 = vsyncadd [#allocation10], 4294967040 }
  0x47   :  { %128 = vsyncpa [#allocation3], 1 }
  0x48   :  { %129 = vsyncpa [#allocation4], 1 }
  0x49   :  { %130 = vsyncpa [#allocation7], 1 }
  0x4a   :  { %131 = vsyncpa [#allocation10], 1 }

// kernel: tpu_custom_call.1
= control target key start
LH: loop header
LB: loop body
LE: loop exit
PB: predicated region body
PF: predicated region fallthrough
CT: control target
= control target key end

     0   :  { %14 = vsyncpa [#allocation3], 0  ;;  %s630_s0 = inlined_call_operand.hbm [shape: f32[16,128], index: 0, kind: input, shape index: {}]   ;;  %s631_s1 = inlined_call_operand.hbm [shape: f32[16,128], index: 1, kind: output, shape index: {0}]   ;;  %s632_s2 = inlined_call_operand.hbm [shape: f32[16,128], index: 2, kind: output, shape index: {1}]   ;;  %s633_s3 = inlined_call_operand.hbm [shape: f32[16,128], index: 3, kind: output, shape index: {2}]   ;;  %s634_s4 = inlined_call_operand.hbm [shape: f32[16,128], index: 4, kind: output, shape index: {3}]   ;;  %s635_s5 = inlined_call_operand.hbm [shape: f32[16,128], index: 5, kind: output, shape index: {4}]   ;;  %s636_s6 = inlined_call_operand.hbm [shape: s8[16,128], index: 6, kind: output, shape index: {5}]   ;;  %s637_s7 = inlined_call_operand.hbm [shape: s8[16,128], index: 7, kind: output, shape index: {6}]   ;;  %s638_s8 = inlined_call_operand.hbm [shape: s8[16,128], index: 8, kind: output, shape index: {7}]  }
   0x1   :  { %15 = vsyncpa [#allocation4], 0 }
   0x2   :  { %16 = vsyncpa [#allocation7], 0 }
   0x3   :  { %17 = vsyncpa [#allocation10], 0 }
   0x4   :  { %18 = vsyncpa [#allocation13], 0 }
   0x5   :  { %19 = vsyncpa [#allocation16], 0  ;;  %s432_s27 = smov [#allocation2]  }
   0x6   :  { %s25_s28 = sshll.u32 %s432_s27, 4  ;;  %s26_s28 = int_to_ptr.vmem [resolvable:$true] %s25_s28 }
   0x7   :  { %s248_s29 = scalar_lea.vmem %s26_s28, 256  ;;  %p253_p1 = scmp.lt.s32.totalorder %s26_s28, %s26_s28 }
   0x8   :  { %p249_p0 = scmp.ne.s32.totalorder %s26_s28, %s248_s29  ;;  %p254_p2 = scmp.lt.s32.totalorder %s248_s29, %s248_s29 }
   0xa   :  { %p255_p3 = por %p254_p2, %p253_p1 }
   0xc   :  { %p256_p4 = pnand %p255_p3, %p249_p0 }
   0xe   :  { %259 = shalt.err (!%p256_p4)
}
   0xf   :  { %s433_s30 = smov 128   ;;  %s434_s9 = smov 8  }
  0x10   :  { %31 = dma.hbm_to_vmem [thread:$0]  %s630_s0, 256, %s26_s28, [#allocation3], %s433_s30, %s433_s30, %s434_s9  }
  0x11   :  { %420 = dma.done.wait [#allocation3], 256  }
  0x12   :  { %421 = vsyncadd [#allocation3], 4294967040  ;;  %s435_s12 = smov [#allocation6]   ;;  %s436_s14 = smov [#allocation9]   ;;  %v501_v0 = vld [vmem:[#allocation2] sm:$0xff]  ;;  %v503_v1 = vld [vmem:[#allocation2 + $0x8] sm:$0xff] }
  0x13   :  { %s115_s13 = sshll.u32 %s435_s12, 4  ;;  %s139_s15 = sshll.u32 %s436_s14, 4  ;;  %v224_v2 = vadd.f32 -2.0, %v501_v0  ;;  %v225_v3 = vadd.f32 -2.0, %v503_v1  ;;  %v51_v4 = vmul.f32 0.25, %v501_v0  ;;  %v52_v5 = vmul.f32 0.25, %v503_v1  ;;  %s497_s13 = int_to_ptr.vmem [resolvable:$true] %s115_s13  ;;  %s499_s15 = int_to_ptr.vmem [resolvable:$true] %s139_s15 }
  0x14   :  { %s437_s16 = smov [#allocation5]   ;;  %s438_s18 = smov [#allocation12]   ;;  %vm59_vm0 = vcmp.gt.f32.partialorder %v501_v0, 10.0  ;;  %vm60_vm1 = vcmp.gt.f32.partialorder %v503_v1, 10.0  ;;  %v39_v6 = vadd.f32 5.0, %v501_v0  ;;  %v40_v7 = vadd.f32 5.0, %v503_v1 }
  0x15   :  { %s103_s17 = sshll.u32 %s437_s16, 4  ;;  %s505_s19 = sshll.u32 %s438_s18, 4  ;;  %45 = vst [vmem:[#allocation6] sm:$0xff] %v224_v2  ;;  %46 = vst [vmem:[#allocation6 + $0x8] sm:$0xff] %v225_v3  ;;  %v47_v9 = vmul.f32 3.0, %v501_v0  ;;  %v48_v10 = vmul.f32 3.0, %v503_v1  ;;  %v55_v11 = vmul.f32 %v501_v0, %v501_v0  ;;  %v56_v12 = vmul.f32 %v503_v1, %v503_v1  ;;  %s511_s17 = int_to_ptr.vmem [resolvable:$true] %s103_s17  ;;  %s164_s19 = int_to_ptr.vmem [resolvable:$true] %s505_s19 }
  0x16   :  { %s439_s0 = smov [#allocation8]   ;;  %s440_s21 = smov [#allocation11]   ;;  %53 = vst [vmem:[#allocation9] sm:$0xff] %v51_v4  ;;  %54 = vst [vmem:[#allocation9 + $0x8] sm:$0xff] %v52_v5  ;;  %vm72_vm4 = vcmp.lt.f32.partialorder %v501_v0, 5.0  ;;  %vm73_vm5 = vcmp.lt.f32.partialorder %v503_v1, 5.0 }
  0x17   :  { %s127_s20 = sshll.u32 %s439_s0, 4  ;;  %s151_s22 = sshll.u32 %s440_s21, 4  ;;  %vm519_vm2 = vmpackc.low %vm60_vm1, %vm59_vm0  ;;  %41 = vst [vmem:[#allocation5] sm:$0xff] %v39_v6  ;;  %vm85_vm6 = vcmp.eq.f32.partialorder %v501_v0, 3.0  ;;  %vm86_vm7 = vcmp.eq.f32.partialorder %v503_v1, 3.0  ;;  %s517_s20 = int_to_ptr.vmem [resolvable:$true] %s127_s20  ;;  %s529_s22 = int_to_ptr.vmem [resolvable:$true] %s151_s22 }
  0x18   :  { %vm62_vm3 = vmpackc.even %vm519_vm2, %vm519_vm2  ;;  %42 = vst [vmem:[#allocation5 + $0x8] sm:$0xff] %v40_v7  ;;  %s260_s23 = scalar_lea.vmem %s497_s13, 256  ;;  %p265_p6 = scmp.lt.s32.totalorder %s497_s13, %s497_s13 }
  0x19   :  { %p261_p5 = scmp.ne.s32.totalorder %s497_s13, %s260_s23  ;;  %p266_p7 = scmp.lt.s32.totalorder %s260_s23, %s260_s23 }
  0x1b   :  { %p267_p8 = por %p266_p7, %p265_p6 }
  0x1d   :  { %p268_p9 = pnand %p267_p8, %p261_p5 }
  0x1f   :  { %271 = shalt.err (!%p268_p9)
}
  0x20   :  { %121 = dma.vmem_to_hbm [thread:$0]  %s497_s13, 256, %s632_s2, [#allocation7], %s433_s30, %s433_s30, %s434_s9   ;;  %v441_v13 = vmov 0   ;;  %49 = vst [vmem:[#allocation8] sm:$0xff] %v47_v9  ;;  %50 = vst [vmem:[#allocation8 + $0x8] sm:$0xff] %v48_v10 }
  0x21   :  { %v63_v14 = vsel %vm62_vm3, 16843009, %v441_v13  ;;  %57 = vst [vmem:[#allocation11] sm:$0xff] %v55_v11  ;;  %58 = vst [vmem:[#allocation11 + $0x8] sm:$0xff] %v56_v12  ;;  %s280_s2 = scalar_lea.vmem %s499_s15, 256  ;;  %p285_p11 = scmp.lt.s32.totalorder %s499_s15, %s499_s15 }
  0x22   :  { %vm558_vm8 = vmpackc.low %vm73_vm5, %vm72_vm4  ;;  %p281_p10 = scmp.ne.s32.totalorder %s499_s15, %s280_s2  ;;  %p286_p12 = scmp.lt.s32.totalorder %s280_s2, %s280_s2 }
  0x24   :  { %p287_p13 = por %p286_p12, %p285_p11 }
  0x26   :  { %p288_p0 = pnand %p287_p13, %p281_p10 }
  0x28   :  { %291 = shalt.err (!%p288_p0)
}
  0x29   :  { %145 = dma.vmem_to_hbm [thread:$0]  %s499_s15, 256, %s634_s4, [#allocation10], %s433_s30, %s433_s30, %s434_s9   ;;  %v64_v16 = vunpack.c.0.s8 %v63_v14  ;;  %v65_v17 = vunpack.c.1.s8 %v63_v14  ;;  %vm75_vm9 = vmpackc.even %vm558_vm8, %vm558_vm8 }
  0x2a   :  { %s300_s28 = scalar_lea.vmem %s511_s17, 256  ;;  %p305_p2 = scmp.lt.s32.totalorder %s511_s17, %s511_s17 }
  0x2b   :  { %p301_p1 = scmp.ne.s32.totalorder %s511_s17, %s300_s28  ;;  %p306_p3 = scmp.lt.s32.totalorder %s300_s28, %s300_s28 }
  0x2d   :  { %p307_p4 = por %p306_p3, %p305_p2 }
  0x2f   :  { %p308_p5 = pnand %p307_p4, %p301_p1 }
  0x31   :  { %311 = shalt.err (!%p308_p5)
}
  0x32   :  { %109 = dma.vmem_to_hbm [thread:$0]  %s511_s17, 256, %s631_s1, [#allocation4], %s433_s30, %s433_s30, %s434_s9   ;;  %v76_v18 = vsel %vm75_vm9, 16843009, %v441_v13  ;;  %vm591_vm10 = vmpackc.low %vm86_vm7, %vm85_vm6 }
  0x33   :  { %s320_s4 = scalar_lea.vmem %s517_s20, 256  ;;  %p325_p7 = scmp.lt.s32.totalorder %s517_s20, %s517_s20 }
  0x34   :  { %p321_p6 = scmp.ne.s32.totalorder %s517_s20, %s320_s4  ;;  %p326_p8 = scmp.lt.s32.totalorder %s320_s4, %s320_s4 }
  0x36   :  { %p327_p9 = por %p326_p8, %p325_p7 }
  0x38   :  { %p328_p10 = pnand %p327_p9, %p321_p6 }
  0x3a   :  { %331 = shalt.err (!%p328_p10)
}
  0x3b   :  { %133 = dma.vmem_to_hbm [thread:$0]  %s517_s20, 256, %s633_s3, [#allocation7], %s433_s30, %s433_s30, %s434_s9   ;;  %v66_v20 = vpack.c.b16 %v64_v16, %v64_v16  ;;  %v68_v21 = vpack.c.b16 %v65_v17, %v65_v17  ;;  %v77_v22 = vunpack.c.0.s8 %v76_v18  ;;  %v78_v23 = vunpack.c.1.s8 %v76_v18  ;;  %vm88_vm11 = vmpackc.even %vm591_vm10, %vm591_vm10 }
  0x3c   :  { %s340_s12 = scalar_lea.vmem %s529_s22, 256  ;;  %p345_p12 = scmp.lt.s32.totalorder %s529_s22, %s529_s22 }
  0x3d   :  { %p341_p11 = scmp.ne.s32.totalorder %s529_s22, %s340_s12  ;;  %p346_p13 = scmp.lt.s32.totalorder %s340_s12, %s340_s12 }
  0x3f   :  { %p347_p0 = por %p346_p13, %p345_p12 }
  0x41   :  { %p348_p1 = pnand %p347_p0, %p341_p11 }
  0x43   :  { %351 = shalt.err (!%p348_p1)
}
  0x44   :  { %157 = dma.vmem_to_hbm [thread:$0]  %s529_s22, 256, %s635_s5, [#allocation10], %s433_s30, %s433_s30, %s434_s9   ;;  %v89_v24 = vsel %vm88_vm11, 16843009, %v441_v13  ;;  %v67_v25 = vpack.c.b8 %v66_v20, %v66_v20  ;;  %v69_v26 = vpack.c.b8 %v68_v21, %v68_v21  ;;  %v79_v27 = vpack.c.b16 %v77_v22, %v77_v22 }
  0x45   :  { %s442_s14 = smov [#allocation14]   ;;  %v81_v28 = vpack.c.b16 %v78_v23, %v78_v23  ;;  %v90_v29 = vunpack.c.0.s8 %v89_v24  ;;  %v91_v30 = vunpack.c.1.s8 %v89_v24  ;;  %s443_s16 = smov [#allocation15]  }
  0x46   :  { %s175_s15 = sshll.u32 %s442_s14, 4  ;;  %s187_s17 = sshll.u32 %s443_s16, 4  ;;  %70 = vst [vmem:[#allocation12] sm:$0x3] %v67_v25  ;;  %71 = vst [vmem:[#allocation12 + $0x2] sm:$0x3] %v69_v26  ;;  %v80_v31 = vpack.c.b8 %v79_v27, %v79_v27  ;;  %s176_s15 = int_to_ptr.vmem [resolvable:$true] %s175_s15  ;;  %s188_s17 = int_to_ptr.vmem [resolvable:$true] %s187_s17 }
  0x47   :  { %v82_v32 = vpack.c.b8 %v81_v28, %v81_v28  ;;  %v92_v33 = vpack.c.b16 %v90_v29, %v90_v29  ;;  %v94_v34 = vpack.c.b16 %v91_v30, %v91_v30  ;;  %s360_s5 = scalar_lea.vmem %s164_s19, 64  ;;  %p365_p3 = scmp.lt.s32.totalorder %s164_s19, %s164_s19 }
  0x48   :  { %p361_p2 = scmp.ne.s32.totalorder %s164_s19, %s360_s5  ;;  %p366_p4 = scmp.lt.s32.totalorder %s360_s5, %s360_s5 }
  0x4a   :  { %p367_p5 = por %p366_p4, %p365_p3 }
  0x4c   :  { %p368_p6 = pnand %p367_p5, %p361_p2 }
  0x4e   :  { %371 = shalt.err (!%p368_p6)
}
  0x4f   :  { %s444_s30 = smov 32   ;;  %s445_s9 = smov 2   ;;  %83 = vst [vmem:[#allocation14] sm:$0x3] %v80_v31  ;;  %84 = vst [vmem:[#allocation14 + $0x2] sm:$0x3] %v82_v32  ;;  %v93_v35 = vpack.c.b8 %v92_v33, %v92_v33  ;;  %v95_v36 = vpack.c.b8 %v94_v34, %v94_v34 }
  0x50   :  { %169 = dma.vmem_to_hbm [thread:$0]  %s164_s19, 64, %s636_s6, [#allocation13], %s444_s30, %s444_s30, %s445_s9  }
  0x51   :  { %s380_s20 = scalar_lea.vmem %s176_s15, 64  ;;  %p385_p8 = scmp.lt.s32.totalorder %s176_s15, %s176_s15 }
  0x52   :  { %p381_p7 = scmp.ne.s32.totalorder %s176_s15, %s380_s20  ;;  %p386_p9 = scmp.lt.s32.totalorder %s380_s20, %s380_s20 }
  0x54   :  { %p387_p10 = por %p386_p9, %p385_p8 }
  0x56   :  { %p388_p11 = pnand %p387_p10, %p381_p7 }
  0x58   :  { %391 = shalt.err (!%p388_p11)
}
  0x59   :  { %181 = dma.vmem_to_hbm [thread:$0]  %s176_s15, 64, %s637_s7, [#allocation13], %s444_s30, %s444_s30, %s445_s9   ;;  %96 = vst [vmem:[#allocation15] sm:$0x3] %v93_v35  ;;  %97 = vst [vmem:[#allocation15 + $0x2] sm:$0x3] %v95_v36 }
  0x5a   :  { %s400_s23 = scalar_lea.vmem %s188_s17, 64  ;;  %p405_p13 = scmp.lt.s32.totalorder %s188_s17, %s188_s17 }
  0x5b   :  { %p401_p12 = scmp.ne.s32.totalorder %s188_s17, %s400_s23  ;;  %p406_p0 = scmp.lt.s32.totalorder %s400_s23, %s400_s23 }
  0x5d   :  { %p407_p1 = por %p406_p0, %p405_p13 }
  0x5f   :  { %p408_p2 = pnand %p407_p1, %p401_p12 }
  0x61   :  { %411 = shalt.err (!%p408_p2)
}
  0x62   :  { %193 = dma.vmem_to_hbm [thread:$0]  %s188_s17, 64, %s638_s8, [#allocation16], %s444_s30, %s444_s30, %s445_s9  }
  0x63   :  { %422 = dma.done.wait [#allocation4], 256  }
  0x64   :  { %423 = vsyncadd [#allocation4], 4294967040 }
  0x65   :  { %424 = dma.done.wait [#allocation7], 512  }
  0x66   :  { %425 = vsyncadd [#allocation7], 4294966784 }
  0x67   :  { %426 = dma.done.wait [#allocation10], 512  }
  0x68   :  { %427 = vsyncadd [#allocation10], 4294966784 }
  0x69   :  { %428 = dma.done.wait [#allocation13], 128  }
  0x6a   :  { %429 = vsyncadd [#allocation13], 4294967168 }
  0x6b   :  { %430 = dma.done.wait [#allocation16], 64  }
  0x6c   :  { %431 = vsyncadd [#allocation16], 4294967232 }
  0x6d   :  { %218 = vsyncpa [#allocation3], 1 }
  0x6e   :  { %219 = vsyncpa [#allocation4], 1 }
  0x6f   :  { %220 = vsyncpa [#allocation7], 1 }
  0x70   :  { %221 = vsyncpa [#allocation10], 1 }
  0x71   :  { %222 = vsyncpa [#allocation13], 1 }
  0x72   :  { %223 = vsyncpa [#allocation16], 1 }

</bundles_post_ra>
